<compile_context>
chip_gen: v6e
topology: v6e:2x2x1
jax: 0.10.0
libtpu: 0.0.40
codegen_flags: <defaults>
</compile_context>

<pallas_src>
import functools

import jax
import jax.numpy as jnp
from jax.experimental import pallas as pl
from jax.experimental.pallas import tpu as pltpu

# Model dimensions implied by the module:
#   fc1: Linear(X_train_poly.shape[1], 64) -> pick D_IN = 128 (synthetic poly features)
#   fc2: Linear(64, 10)
D_IN = 128
HIDDEN = 64
N_CLASSES = 10


def mlp_kernel(x_ref, w1_ref, b1_ref, w2_ref, b2_ref, o_ref):
    # fc1: bf16 operands on the MXU, f32 accumulation; bias + ReLU in f32.
    h = jnp.dot(x_ref[...], w1_ref[...], preferred_element_type=jnp.float32)
    h = jnp.maximum(h + b1_ref[...], 0.0)
    # fc2: re-quantize the activation to bf16 for a native MXU pass; f32 epilogue.
    y = jnp.dot(h.astype(jnp.bfloat16), w2_ref[...],
                preferred_element_type=jnp.float32)
    o_ref[...] = (y + b2_ref[...]).astype(o_ref.dtype)


@functools.partial(jax.jit, static_argnames=("tb_max",))
def digits_classifier(x, w1, b1, w2, b2, *, tb_max=1024):
    """logits = relu(x @ w1 + b1) @ w2 + b2.

    Weights are stored pre-transposed [in, out] (i.e. PyTorch weight.T), so the
    kernel computes y = x @ W + b directly on the MXU.
    """
    B, d_in = x.shape
    hidden = w1.shape[1]
    n_cls = w2.shape[1]
    assert d_in == w1.shape[0] and hidden == w2.shape[0]

    # bf16 operands: native MXU dtype, halves the dominant x-read bytes.
    # (Production callers should pass bf16 activations so this cast is a no-op.)
    x = x.astype(jnp.bfloat16)
    w1 = w1.astype(jnp.bfloat16)
    w2 = w2.astype(jnp.bfloat16)
    b1 = b1.reshape(1, hidden).astype(jnp.float32)
    b2 = b2.reshape(1, n_cls).astype(jnp.float32)

    # Batch tile: large enough to amortize the ~0.35us/grid-step overhead, but
    # clamped so the 'parallel' grid keeps >= 2 steps (v7x has 2 TensorCores).
    # No padding of x: the ragged last tile is handled by Pallas masking.
    if B <= 16:
        tb = B                                        # block == full dim (always legal)
    else:
        half = (B + 1) // 2
        tb = min(tb_max, (half + 15) // 16 * 16)      # multiple of 16 (bf16 sublane pack)
    grid = (pl.cdiv(B, tb),)

    flops = 2 * B * (d_in * hidden + hidden * n_cls)
    bytes_accessed = (2 * B * d_in                              # x (bf16)
                      + 4 * B * n_cls                           # logits (f32)
                      + 2 * (d_in * hidden + hidden * n_cls)    # weights (bf16)
                      + 4 * (hidden + n_cls))                   # biases (f32)

    return pl.pallas_call(
        mlp_kernel,
        out_shape=jax.ShapeDtypeStruct((B, n_cls), jnp.float32),
        grid_spec=pltpu.PrefetchScalarGridSpec(
            num_scalar_prefetch=0,
            grid=grid,
            in_specs=[
                pl.BlockSpec((tb, d_in), lambda i: (i, 0)),        # x tile (streams)
                pl.BlockSpec((d_in, hidden), lambda i: (0, 0)),    # W1 (VMEM-resident)
                pl.BlockSpec((1, hidden), lambda i: (0, 0)),       # b1 (resident)
                pl.BlockSpec((hidden, n_cls), lambda i: (0, 0)),   # W2 (resident)
                pl.BlockSpec((1, n_cls), lambda i: (0, 0)),        # b2 (resident)
            ],
            # Narrow 10-wide output block (== full class dim): no 128-pad writeback.
            out_specs=pl.BlockSpec((tb, n_cls), lambda i: (i, 0)),
        ),
        compiler_params=pltpu.CompilerParams(
            dimension_semantics=("parallel",),        # megacore-shardable on v7x
            vmem_limit_bytes=32 * 1024 * 1024,
        ),
        cost_estimate=pl.CostEstimate(
            flops=flops, transcendentals=0, bytes_accessed=bytes_accessed),
    )(x, w1, b1, w2, b2)


def init_params(key):
    # PyTorch nn.Linear default init: U(-1/sqrt(fan_in), 1/sqrt(fan_in)),
    # stored pre-transposed as [in, out].
    k1, k2, k3, k4 = jax.random.split(key, 4)
    bound1 = 1.0 / (D_IN ** 0.5)
    bound2 = 1.0 / (HIDDEN ** 0.5)
    w1 = jax.random.uniform(k1, (D_IN, HIDDEN), jnp.float32, -bound1, bound1)
    b1 = jax.random.uniform(k2, (1, HIDDEN), jnp.float32, -bound1, bound1)
    w2 = jax.random.uniform(k3, (HIDDEN, N_CLASSES), jnp.float32, -bound2, bound2)
    b2 = jax.random.uniform(k4, (1, N_CLASSES), jnp.float32, -bound2, bound2)
    return w1, b1, w2, b2


if __name__ == "__main__":
    key = jax.random.PRNGKey(0)
    kx, kp = jax.random.split(key)

    # Small demo batch, deliberately NOT a tile multiple: exercises the ragged
    # last tile and still yields a 2-step parallel grid (both v7x cores busy).
    B = 520
    # bf16 activations directly -> the wrapper's bf16 cast is a no-op (no extra HBM pass).
    x = jax.random.normal(kx, (B, D_IN), jnp.bfloat16)
    w1, b1, w2, b2 = init_params(kp)

    out = jax.block_until_ready(digits_classifier(x, w1, b1, w2, b2))

    # Reference in plain JAX with operands quantized the same way as the kernel.
    xf = x.astype(jnp.float32)
    w1f = w1.astype(jnp.bfloat16).astype(jnp.float32)
    w2f = w2.astype(jnp.bfloat16).astype(jnp.float32)
    ref = jnp.maximum(xf @ w1f + b1, 0.0) @ w2f + b2

    assert out.shape == (B, N_CLASSES)
    assert out.dtype == jnp.float32
    assert jnp.allclose(out, ref, atol=1e-2, rtol=1e-2), \
        float(jnp.max(jnp.abs(out - ref)))

    print("KERNEL_OK")
</pallas_src>

<mosaic_0001>
module attributes {stable_mosaic.version = 11 : i64} {
  func.func @mlp_kernel(%arg0: i32, %arg1: memref<272x128xbf16, #tpu.memory_space<vmem>>, %arg2: memref<128x64xbf16, #tpu.memory_space<vmem>>, %arg3: memref<1x64xf32, #tpu.memory_space<vmem>>, %arg4: memref<64x10xbf16, #tpu.memory_space<vmem>>, %arg5: memref<1x10xf32, #tpu.memory_space<vmem>>, %arg6: memref<272x10xf32, #tpu.memory_space<vmem>>) attributes {dimension_semantics = [#tpu.dimension_semantics<parallel>], iteration_bounds = array<i64: 2>, scalar_prefetch = 0 : i64, scratch_operands = 0 : i64, tpu.core_type = #tpu.core_type<tc>, window_params = [{transform_indices = @transform_0, window_bounds = array<i64: 272, 128>}, {pipeline_mode = #tpu.pipeline_mode<synchronous>, transform_indices = @transform_1, window_bounds = array<i64: 128, 64>}, {pipeline_mode = #tpu.pipeline_mode<synchronous>, transform_indices = @transform_2, window_bounds = array<i64: 1, 64>}, {pipeline_mode = #tpu.pipeline_mode<synchronous>, transform_indices = @transform_3, window_bounds = array<i64: 64, 10>}, {pipeline_mode = #tpu.pipeline_mode<synchronous>, transform_indices = @transform_4, window_bounds = array<i64: 1, 10>}, {transform_indices = @transform_5, window_bounds = array<i64: 272, 10>}]} {
    %c0 = arith.constant 0 : index
    %c0_0 = arith.constant 0 : index
    %0 = vector.load %arg1[%c0, %c0_0] : memref<272x128xbf16, #tpu.memory_space<vmem>>, vector<272x128xbf16>
    %c0_1 = arith.constant 0 : index
    %c0_2 = arith.constant 0 : index
    %1 = vector.load %arg2[%c0_1, %c0_2] : memref<128x64xbf16, #tpu.memory_space<vmem>>, vector<128x64xbf16>
    %cst = arith.constant dense<0.000000e+00> : vector<272x64xf32>
    %2 = tpu.matmul %0, %1, %cst {dimension_numbers = #tpu.dot_dimension_numbers<[1], [0], [0], [1], [0, 0, 1, 1], [], []>} : vector<272x128xbf16>, vector<128x64xbf16>, vector<272x64xf32> -> vector<272x64xf32>
    %c0_3 = arith.constant 0 : index
    %c0_4 = arith.constant 0 : index
    %3 = vector.load %arg3[%c0_3, %c0_4] : memref<1x64xf32, #tpu.memory_space<vmem>>, vector<1x64xf32>
    %4 = vector.broadcast %3 : vector<1x64xf32> to vector<272x64xf32>
    %5 = arith.addf %2, %4 : vector<272x64xf32>
    %cst_5 = arith.constant 0.000000e+00 : f32
    %6 = vector.broadcast %cst_5 : f32 to vector<272x64xf32>
    %7 = arith.maximumf %5, %6 : vector<272x64xf32>
    %8 = arith.truncf %7 : vector<272x64xf32> to vector<272x64xbf16>
    %c0_6 = arith.constant 0 : index
    %c0_7 = arith.constant 0 : index
    %9 = vector.load %arg4[%c0_6, %c0_7] : memref<64x10xbf16, #tpu.memory_space<vmem>>, vector<64x10xbf16>
    %cst_8 = arith.constant dense<0.000000e+00> : vector<272x10xf32>
    %10 = tpu.matmul %8, %9, %cst_8 {dimension_numbers = #tpu.dot_dimension_numbers<[1], [0], [0], [1], [0, 0, 1, 1], [], []>} : vector<272x64xbf16>, vector<64x10xbf16>, vector<272x10xf32> -> vector<272x10xf32>
    %c0_9 = arith.constant 0 : index
    %c0_10 = arith.constant 0 : index
    %11 = vector.load %arg5[%c0_9, %c0_10] : memref<1x10xf32, #tpu.memory_space<vmem>>, vector<1x10xf32>
    %12 = vector.broadcast %11 : vector<1x10xf32> to vector<272x10xf32>
    %13 = arith.addf %10, %12 : vector<272x10xf32>
    %c0_11 = arith.constant 0 : index
    %c0_12 = arith.constant 0 : index
    %14 = vector.load %arg6[%c0_11, %c0_12] : memref<272x10xf32, #tpu.memory_space<vmem>>, vector<272x10xf32>
    tpu.vector_store %arg6[%c0_11, %c0_12], %13 {strides = array<i32>} : memref<272x10xf32, #tpu.memory_space<vmem>>, vector<272x10xf32>,
    return
  }
  func.func @transform_0(%arg0: i32) -> (i32, i32) {
    %c0_i32 = arith.constant 0 : i32
    %c0_i32_0 = arith.constant 0 : i32
    return %arg0, %c0_i32 : i32, i32
  }
  func.func @transform_1(%arg0: i32) -> (i32, i32) {
    %c0_i32 = arith.constant 0 : i32
    %c0_i32_0 = arith.constant 0 : i32
    %c0_i32_1 = arith.constant 0 : i32
    return %c0_i32, %c0_i32_0 : i32, i32
  }
  func.func @transform_2(%arg0: i32) -> (i32, i32) {
    %c0_i32 = arith.constant 0 : i32
    %c0_i32_0 = arith.constant 0 : i32
    %c0_i32_1 = arith.constant 0 : i32
    return %c0_i32, %c0_i32_0 : i32, i32
  }
  func.func @transform_3(%arg0: i32) -> (i32, i32) {
    %c0_i32 = arith.constant 0 : i32
    %c0_i32_0 = arith.constant 0 : i32
    %c0_i32_1 = arith.constant 0 : i32
    return %c0_i32, %c0_i32_0 : i32, i32
  }
  func.func @transform_4(%arg0: i32) -> (i32, i32) {
    %c0_i32 = arith.constant 0 : i32
    %c0_i32_0 = arith.constant 0 : i32
    %c0_i32_1 = arith.constant 0 : i32
    return %c0_i32, %c0_i32_0 : i32, i32
  }
  func.func @transform_5(%arg0: i32) -> (i32, i32) {
    %c0_i32 = arith.constant 0 : i32
    %c0_i32_0 = arith.constant 0 : i32
    return %arg0, %c0_i32 : i32, i32
  }
}

</mosaic_0001>

<bundles_post_ra>
// kernel: digits_classifier.1
= control target key start
LH: loop header
LB: loop body
LE: loop exit
PB: predicated region body
PF: predicated region fallthrough
CT: control target
= control target key end

     0   :  { %10 = vsyncpa [#allocation3], 0  ;;  %s2451_s0 = inlined_call_operand.hbm [shape: bf16[520,128], index: 0, kind: input, shape index: {}]   ;;  %s2452_s1 = inlined_call_operand.vmem [shape: bf16[128,64], index: 1, kind: input, shape index: {}]   ;;  %s2453_s2 = inlined_call_operand.vmem [shape: f32[1,64], index: 2, kind: input, shape index: {}]   ;;  %s2454_s3 = inlined_call_operand.vmem [shape: bf16[64,10], index: 3, kind: input, shape index: {}]   ;;  %s2455_s4 = inlined_call_operand.vmem [shape: f32[1,10], index: 4, kind: input, shape index: {}]   ;;  %s2456_s5 = inlined_call_operand.vmem [shape: f32[520,10], index: 5, kind: output, shape index: {}]  }
   0x1   :  { %12 = vsyncpa [#allocation3 + $0x1], 0  ;;  %s1915_s18 = smov 0   ;;  %s1917_s19 = smov 0  }
   0x2   :  { %s1919_s20 = smov 0   ;;  %s1921_s21 = smov 0  }
   0x3 LB: > { %s1934_s22 = sadd.s32 4294967295, %s1846_s21   ;;  %s1937_s23 = sadd.s32 1, %s1846_s21   ;;  %s1846_s21 = sphi %s1921_s21, %s2467_s21   ;;  %s1842_s20 = sphi %s1919_s20, %s2466_s20   ;;  %s1838_s19 = sphi %s1917_s19, %s2465_s19   ;;  %s1834_s18 = sphi %s1915_s18, %s2464_s18  }
   0x4   : > { %s22_s24 = ssub.s32 %s1846_s21, %s1937_s23  ;;  %s25_s25 = sadd.s32 1, %s1842_s20 }
   0x5   : > { %p23_p0 = scmp.eq.s32.totalorder %s22_s24, 0  ;;  %p32_p1 = scmp.ne.s32.totalorder %s1842_s20, %s1838_s19 }
   0x6   : > { %p33_p2 = scmp.eq.s32.totalorder %s1846_s21, 0  ;;  %p38_p3 = scmp.ne.s32.totalorder %s1838_s19, %s1834_s18 }
   0x7   : > { %s1947_s26 = scalar_select %p23_p0, %s1842_s20, %s25_s25  }
   0x8   : > { %p34_p4 = por %p33_p2, %p32_p1  ;;  %p39_p5 = scmp.eq.s32.totalorder %s1934_s22, 0 }
   0x9   : > { %p146_p6 = scmp.eq.s32.totalorder %s1934_s22, 1  ;;  %p1341_p9 = scmp.ge.s32.totalorder %s1846_s21, 2 }
   0xa   : > { %p1951_p7 = por %p39_p5, %p38_p3 }
   0xb   : > { %p1955_p8 = por %p146_p6, %p32_p1  ;;  %180 = sbr.rel (%p1341_p9) target bundleno = 50 (0x32), region = 32 }
  0x10   : > { %183 = sbr.rel (!%p34_p4) target bundleno = 50 (0x32), region = 36  ;;  %s184_s29 = sand.u32 (%p34_p4), 1, %s1842_s20  }
  0x11   : > { %s189_s30 = smul.u32 (%p34_p4), 34, %s1846_s21  ;;  %s1965_s10 = scalar_lea.sflag (%p34_p4), [#allocation3], %s184_s29 }
  0x12   : > { %s1616_s6 = smul.u32 (%p34_p4), 136, %s184_s29 }
  0x13   : > { %s190_s7 = ssub.s32 (%p34_p4), 65, %s189_s30 }
  0x14   : > { %p191_p10 = scmp.lt.s32.totalorder (%p34_p4), %s190_s7, 34  ;;  %s188_s11 = scalar_lea.vmem (%p34_p4), [#allocation2], %s1616_s6 }
  0x16   : > { %s2469_s7 = smov (!%p191_p10, %s190_s7), 34 }
  0x17   : > { %s1962_s8 = sshll.u32 %s2469_s7, 6 }
  0x18   : > { %s195_s9 = ssub.s32 2176, %s1962_s8 }
  0x19   : > { %196 = vsyncadd %s1965_s10, %s195_s9  ;;  %p1343_p11 = scmp.ne.s32.totalorder %s1962_s8, 0  ;;  %s1408_s12 = smul.u32 2176, %s1846_s21 }
  0x1a   : > { %s201_s13 = sshll.u32 %s188_s11, 4  ;;  %s1758_s25 = scalar_lea.hbm %s2451_s0, 4160  ;;  %s1975_s13 = int_to_ptr.vmem [resolvable:$true] %s201_s13 }
  0x1b   : > { %s1973_s16 = scalar_lea.hbm %s2451_s0, %s1408_s12 }
  0x1c   : > { %s1754_s17 = scalar_lea.hbm %s1973_s16, %s1962_s8  ;;  %p1759_p1 = scmp.lt.s32.totalorder %s1973_s16, %s2451_s0 }
  0x1d   : > { %p1755_p12 = scmp.ne.s32.totalorder %s1973_s16, %s1754_s17  ;;  %p1760_p2 = scmp.lt.s32.totalorder %s1758_s25, %s1754_s17 }
  0x1f   : > { %p1756_p13 = pnand %p1755_p12, %p1343_p11  ;;  %p1761_p3 = por %p1760_p2, %p1759_p1 }
  0x21   : > { %p1757_p0 = pneg %p1756_p13 }
  0x23   : > { %p1762_p4 = pnand %p1761_p3, %p1757_p0 }
  0x25   : > { %1765 = shalt.err (!%p1762_p4)
}
  0x26   : > { %s1766_s6 = scalar_lea.vmem %s1975_s13, %s1962_s8  ;;  %s1880_s7 = smov [#allocation2]  }
  0x27   : > { %p1767_p5 = scmp.ne.s32.totalorder %s1975_s13, %s1766_s6  ;;  %s1770_s9 = sshll.u32 %s1880_s7, 4  ;;  %s1771_s9 = int_to_ptr.vmem [resolvable:$false] %s1770_s9 }
  0x28   : > { %s1772_s11 = scalar_lea.vmem %s1771_s9, 4352  ;;  %p1773_p10 = scmp.lt.s32.totalorder %s1975_s13, %s1771_s9 }
  0x29   : > { %p1768_p6 = pnand %p1767_p5, %p1343_p11  ;;  %p1774_p12 = scmp.lt.s32.totalorder %s1772_s11, %s1766_s6 }
  0x2b   : > { %p1769_p9 = pneg %p1768_p6  ;;  %p1775_p13 = por %p1774_p12, %p1773_p10 }
  0x2d   : > { %p1776_p1 = pnand %p1775_p13, %p1769_p9 }
  0x2f   : > { %1779 = shalt.err (!%p1776_p1)
}
  0x30   : > { %s1881_s12 = smov 64   ;;  %s1882_s14 = smov 4  }
  0x31   : > { %207 = dma.hbm_to_vmem [thread:$0]  (%p1343_p11), %s1973_s16, %s1962_s8, %s1975_s13, %s1965_s10, %s1881_s12, %s1881_s12, %s1882_s14  }
  0x32 PF: > { %p1347_p0 = scmp.ge.s32.totalorder %s1846_s21, 1  ;;  %p209_p2 = scmp.lt.s32.totalorder %s1846_s21, 3 }
  0x34   : > { %p210_p3 = pnand %p1347_p0, %p209_p2 }
  0x35   : > { %s2004_s15 = sand.u32 (!%p210_p3), 1, %s1838_s19  }
  0x36   : > { %213 = sbr.rel (%p210_p3) target bundleno = 688 (0x2b0), region = 40  ;;  %s216_s18 = scalar_lea.sflag (!%p210_p3), [#allocation3], %s2004_s15 }
  0x37   : > { %s1617_s17 = smul.u32 (!%p210_p3), 136, %s2004_s15 }
  0x39   : > { %s2008_s24 = scalar_lea.vmem (!%p210_p3), [#allocation2], %s1617_s17 }
  0x3b   : > { %1829 = dma.done.wait (%p1951_p7), %s216_s18, 2176  }
  0x3c   : > { %1831 = vsyncadd (%p1951_p7), %s216_s18, 4294965120  ;;  %v1883_v0 = vmov 0.0   ;;  %vm1884_vm0 = vmmov 0   ;;  %v1721_v1 = vld [vmem:[%s2452_s1 + $0x38] sm:$0xff]   ;;  %v1722_v2 = vld [vmem:[%s2452_s1 + $0x30] sm:$0xff]   ;;  %vm722_vm1 = vcmask 523264  }
  0x3d   : > { %1456 = vmatprep.subr.bf16.mxu0 %v1883_v0  ;;  %1472 = vmatprep.mubr.msk.bf16.mxu0 %vm1884_vm0, %v1883_v0  ;;  %v1723_v3 = vld [vmem:[%s2452_s1 + $0x28] sm:$0xff]   ;;  %v1724_v4 = vld [vmem:[%s2452_s1 + $0x20] sm:$0xff]   ;;  %v1725_v5 = vld [vmem:[%s2452_s1 + $0x18] sm:$0xff]   ;;  %vm943_vm2 = vcmask 80896   ;;  %s1409_s11 = smul.u32 (%p1955_p8), 272, %s1934_s22 }
  0x3e   : > { %1540 = vmatprep.subr.bf16.mxu1 %v1883_v0  ;;  %1548 = vmatprep.mubr.msk.bf16.mxu1 %vm1884_vm0, %v1883_v0  ;;  %v1726_v6 = vld [vmem:[%s2452_s1 + $0x10] sm:$0xff]   ;;  %v1727_v7 = vld [vmem:[%s2452_s1 + $0x8] sm:$0xff]   ;;  %v1728_v8 = vld [vmem:[%s2452_s1] sm:$0xff]  }
  0x3f   : > { %1457 = vmatpush3.bf16.msra.mxu0 %v1721_v1  ;;  %v1729_v9 = vld [vmem:[%s2008_s24] sm:$0xff]   ;;  %v1746_v10 = vld [vmem:[%s2454_s3 + $0x18] sm:$0xff]   ;;  %v1730_v11 = vld [vmem:[%s2008_s24 + $0x8] sm:$0xff]   ;;  %s2320_s18 = scalar_lea.vmem (%p1955_p8), %s2456_s5, %s1409_s11  }
  0x40   : > { %1458 = vmatprep.subr.bf16.mxu0 %v1883_v0  ;;  %1541 = vmatpush3.bf16.msra.mxu1 %v1746_v10  ;;  %v1731_v12 = vld [vmem:[%s2008_s24 + $0x10] sm:$0xff]   ;;  %v1732_v13 = vld [vmem:[%s2008_s24 + $0x18] sm:$0xff]   ;;  %v1733_v14 = vld [vmem:[%s2008_s24 + $0x20] sm:$0xff]  }
  0x41   : > { %1542 = vmatprep.subr.bf16.mxu1 %v1883_v0  ;;  %v1734_v15 = vld [vmem:[%s2008_s24 + $0x28] sm:$0xff]   ;;  %v1735_v16 = vld [vmem:[%s2008_s24 + $0x30] sm:$0xff]   ;;  %v1736_v17 = vld [vmem:[%s2008_s24 + $0x38] sm:$0xff]  }
  0x42   : > { %v1737_v18 = vld [vmem:[%s2008_s24 + $0x40] sm:$0xff]   ;;  %v1747_v19 = vld [vmem:[%s2454_s3 + $0x10] sm:$0xff]   ;;  %v1740_v24 = vld [vmem:[%s2008_s24 + $0x58] sm:$0xff]  }
  0x43   : > { %1459 = vmatpush3.bf16.msra.mxu0 %v1722_v2  ;;  %v1748_v20 = vld [vmem:[%s2454_s3 + $0x8] sm:$0xff]   ;;  %v1749_v22 = vld [vmem:[%s2454_s3] sm:$0xff]   ;;  %v1739_v23 = vld [vmem:[%s2008_s24 + $0x50] sm:$0xff]  }
  0x44   : > { %1460 = vmatprep.subr.bf16.mxu0 %v1883_v0  ;;  %1543 = vmatpush3.bf16.msra.mxu1 %v1747_v19  ;;  %v1738_v21 = vld [vmem:[%s2008_s24 + $0x48] sm:$0xff]   ;;  %v1741_v25 = vld [vmem:[%s2008_s24 + $0x60] sm:$0xff]   ;;  %v1743_v27 = vld [vmem:[%s2008_s24 + $0x70] sm:$0xff]  }
  0x45   : > { %1544 = vmatprep.subr.bf16.mxu1 %v1883_v0  ;;  %v1742_v26 = vld [vmem:[%s2008_s24 + $0x68] sm:$0xff]   ;;  %v1744_v28 = vld [vmem:[%s2008_s24 + $0x78] sm:$0xff]   ;;  %v1745_v29 = vld [vmem:[%s2008_s24 + $0x80] sm:$0xff]   ;;  %s1618_s24 = smul.u32 272, %s2004_s15 }
  0x46   : > { %v2118_v30 = vld [vmem:[%s2453_s2] ss:$0 sm:$0xff]  ;;  %s985_s15 = smul.u32 (%p1955_p8), 34, %s1934_s22 }
  0x47   : > { %1461 = vmatpush3.bf16.msra.mxu0 %v1723_v3  ;;  %s2210_s9 = scalar_lea.vmem [#allocation4], %s1618_s24  }
  0x48   : > { %1462 = vmatprep.subr.bf16.mxu0 %v1883_v0  ;;  %1545 = vmatpush3.bf16.msra.mxu1 %v1748_v20  ;;  %s986_s12 = ssub.s32 (%p1955_p8), 65, %s985_s15 }
  0x49   : > { %1546 = vmatprep.subr.bf16.mxu1 %v1883_v0  ;;  %p987_p7 = scmp.lt.s32.totalorder (%p1955_p8), %s986_s12, 34 }
  0x4b   : > { %1463 = vmatpush3.bf16.msra.mxu0 %v1724_v4 }
  0x4c   : > { %1464 = vmatprep.subr.bf16.mxu0 %v1883_v0  ;;  %1547 = vmatpush3.bf16.msra.mxu1 %v1749_v22 }
  0x4f   : > { %1465 = vmatpush3.bf16.msra.mxu0 %v1725_v5 }
  0x50   : > { %1466 = vmatprep.subr.bf16.mxu0 %v1883_v0 }
  0x53   : > { %1467 = vmatpush3.bf16.msra.mxu0 %v1726_v6 }
  0x54   : > { %1468 = vmatprep.subr.bf16.mxu0 %v1883_v0 }
  0x57   : > { %1469 = vmatpush3.bf16.msra.mxu0 %v1727_v7 }
  0x58   : > { %1470 = vmatprep.subr.bf16.mxu0 %v1883_v0 }
  0x5b   : > { %1471 = vmatpush3.bf16.msra.mxu0 %v1728_v8 }
  0x5e   : > { %1473 = vmatmul.mubr.bf16.vlgmr.msra.gmra.mxu0 %v1729_v9 }
  0x5f   : > { %1476 = vmatprep.mubr.msk.bf16.mxu0 %vm1884_vm0, %v1883_v0 }
  0x66   : > { %1477 = vmatmul.mubr.bf16.gmra.mxu0 %v1730_v11 }
  0x67   : > { %1480 = vmatprep.mubr.msk.bf16.mxu0 %vm1884_vm0, %v1883_v0 }
  0x6e   : > { %1481 = vmatmul.mubr.bf16.gmra.mxu0 %v1731_v12 }
  0x6f   : > { %1484 = vmatprep.mubr.msk.bf16.mxu0 %vm1884_vm0, %v1883_v0 }
  0x76   : > { %1485 = vmatmul.mubr.bf16.gmra.mxu0 %v1732_v13 }
  0x77   : > { %1488 = vmatprep.mubr.msk.bf16.mxu0 %vm1884_vm0, %v1883_v0 }
  0x7e   : > { %1489 = vmatmul.mubr.bf16.gmra.mxu0 %v1733_v14 }
  0x7f   : > { %1492 = vmatprep.mubr.msk.bf16.mxu0 %vm1884_vm0, %v1883_v0 }
  0x86   : > { %1493 = vmatmul.mubr.bf16.gmra.mxu0 %v1734_v15 }
  0x87   : > { %1496 = vmatprep.mubr.msk.bf16.mxu0 %vm1884_vm0, %v1883_v0 }
  0x8e   : > { %1497 = vmatmul.mubr.bf16.gmra.mxu0 %v1735_v16 }
  0x8f   : > { %1500 = vmatprep.mubr.msk.bf16.mxu0 %vm1884_vm0, %v1883_v0 }
  0x96   : > { %1501 = vmatmul.mubr.bf16.gmra.mxu0 %v1736_v17 }
  0x97   : > { %1504 = vmatprep.mubr.msk.bf16.mxu0 %vm1884_vm0, %v1883_v0 }
  0x9e   : > { %1505 = vmatmul.mubr.bf16.gmra.mxu0 %v1737_v18 }
  0x9f   : > { %1508 = vmatprep.mubr.msk.bf16.mxu0 %vm1884_vm0, %v1883_v0 }
  0xa6   : > { %1509 = vmatmul.mubr.bf16.gmra.mxu0 %v1738_v21 }
  0xa7   : > { %1512 = vmatprep.mubr.msk.bf16.mxu0 %vm1884_vm0, %v1883_v0 }
  0xae   : > { %1513 = vmatmul.mubr.bf16.gmra.mxu0 %v1739_v23 }
  0xaf   : > { %1516 = vmatprep.mubr.msk.bf16.mxu0 %vm1884_vm0, %v1883_v0 }
  0xb6   : > { %1517 = vmatmul.mubr.bf16.gmra.mxu0 %v1740_v24 }
  0xb7   : > { %1520 = vmatprep.mubr.msk.bf16.mxu0 %vm1884_vm0, %v1883_v0 }
  0xbe   : > { %1521 = vmatmul.mubr.bf16.gmra.mxu0 %v1741_v25 }
  0xbf   : > { %1524 = vmatprep.mubr.msk.bf16.mxu0 %vm1884_vm0, %v1883_v0 }
  0xc6   : > { %1525 = vmatmul.mubr.bf16.gmra.mxu0 %v1742_v26 }
  0xc7   : > { %1528 = vmatprep.mubr.msk.bf16.mxu0 %vm1884_vm0, %v1883_v0 }
  0xce   : > { %1529 = vmatmul.mubr.bf16.gmra.mxu0 %v1743_v27 }
  0xcf   : > { %1532 = vmatprep.mubr.msk.bf16.mxu0 %vm1884_vm0, %v1883_v0 }
  0xd6   : > { %1533 = vmatmul.mubr.bf16.gmra.mxu0 %v1744_v28 }
  0xd7   : > { %1536 = vmatprep.mubr.msk.bf16.mxu0 %vm1884_vm0, %v1883_v0 }
  0xde   : > { %1537 = vmatmul.mubr.bf16.gmra.mxu0 %v1745_v29 }
 0x11e   : > { %v497_v31 = vpop.f32.mrf.mxu0 }
 0x11f   : > { %v498_v33 = vadd.f32 %v2118_v30, %v497_v31 }
 0x120   : > { %v1474_v32 = vpop.f32.mrf.mxu0 }
 0x121   : > { %v632_v37 = vmax.f32 %v498_v33, 0.0 }
 0x122   : > { %v500_v34 = vpop.f32.mrf.mxu0 }
 0x123   : > { %v501_v35 = vadd.f32 %v2118_v30, %v500_v34 }
 0x124   : > { %v1475_v36 = vpop.f32.mrf.mxu0 }
 0x125   : > { %v633_v38 = vmax.f32 %v501_v35, 0.0 }
 0x126   : > { %v505_v39 = vpop.f32.mrf.mxu0 }
 0x127   : > { %v666_v40 = vpack.c.bf16 %v633_v38, %v632_v37  ;;  %v506_v42 = vadd.f32 %v2118_v30, %v505_v39 }
 0x128   : > { %v1478_v41 = vpop.f32.mrf.mxu0 }
 0x129   : > { %1549 = vmatmul.mubr.msk.bf16.vlgmr.msra.gmra.mxu1 %vm722_vm1, %v666_v40  ;;  %v634_v46 = vmax.f32 %v506_v42, 0.0 }
 0x12a   : > { %v508_v43 = vpop.f32.mrf.mxu0  ;;  %1552 = vmatprep.mubr.msk.bf16.mxu1 %vm1884_vm0, %v1883_v0 }
 0x12b   : > { %v509_v44 = vadd.f32 %v2118_v30, %v508_v43 }
 0x12c   : > { %v1479_v45 = vpop.f32.mrf.mxu0 }
 0x12d   : > { %v635_v47 = vmax.f32 %v509_v44, 0.0 }
 0x12e   : > { %v513_v48 = vpop.f32.mrf.mxu0 }
 0x12f   : > { %v667_v49 = vpack.c.bf16 %v635_v47, %v634_v46  ;;  %v514_v51 = vadd.f32 %v2118_v30, %v513_v48 }
 0x130   : > { %v1482_v50 = vpop.f32.mrf.mxu0 }
 0x131   : > { %1553 = vmatmul.mubr.msk.bf16.gmra.mxu1 %vm722_vm1, %v667_v49  ;;  %v636_v55 = vmax.f32 %v514_v51, 0.0 }
 0x132   : > { %v516_v52 = vpop.f32.mrf.mxu0  ;;  %1556 = vmatprep.mubr.msk.bf16.mxu1 %vm1884_vm0, %v1883_v0 }
 0x133   : > { %v517_v53 = vadd.f32 %v2118_v30, %v516_v52 }
 0x134   : > { %v1483_v54 = vpop.f32.mrf.mxu0 }
 0x135   : > { %v637_v56 = vmax.f32 %v517_v53, 0.0 }
 0x136   : > { %v521_v57 = vpop.f32.mrf.mxu0 }
 0x137   : > { %v668_v58 = vpack.c.bf16 %v637_v56, %v636_v55  ;;  %v522_v60 = vadd.f32 %v2118_v30, %v521_v57 }
 0x138   : > { %v1486_v59 = vpop.f32.mrf.mxu0 }
 0x139   : > { %1557 = vmatmul.mubr.msk.bf16.gmra.mxu1 %vm722_vm1, %v668_v58  ;;  %v638_v1 = vmax.f32 %v522_v60, 0.0 }
 0x13a   : > { %v524_v61 = vpop.f32.mrf.mxu0  ;;  %1560 = vmatprep.mubr.msk.bf16.mxu1 %vm1884_vm0, %v1883_v0 }
 0x13b   : > { %v525_v62 = vadd.f32 %v2118_v30, %v524_v61 }
 0x13c   : > { %v1487_v63 = vpop.f32.mrf.mxu0 }
 0x13d   : > { %v639_v2 = vmax.f32 %v525_v62, 0.0 }
 0x13e   : > { %v529_v3 = vpop.f32.mrf.mxu0 }
 0x13f   : > { %v669_v4 = vpack.c.bf16 %v639_v2, %v638_v1  ;;  %v530_v6 = vadd.f32 %v2118_v30, %v529_v3 }
 0x140   : > { %v1490_v5 = vpop.f32.mrf.mxu0 }
 0x141   : > { %1561 = vmatmul.mubr.msk.bf16.gmra.mxu1 %vm722_vm1, %v669_v4  ;;  %v640_v10 = vmax.f32 %v530_v6, 0.0 }
 0x142   : > { %v532_v7 = vpop.f32.mrf.mxu0  ;;  %1564 = vmatprep.mubr.msk.bf16.mxu1 %vm1884_vm0, %v1883_v0 }
 0x143   : > { %v533_v8 = vadd.f32 %v2118_v30, %v532_v7 }
 0x144   : > { %v1491_v9 = vpop.f32.mrf.mxu0 }
 0x145   : > { %v641_v11 = vmax.f32 %v533_v8, 0.0 }
 0x146   : > { %v537_v12 = vpop.f32.mrf.mxu0 }
 0x147   : > { %v670_v13 = vpack.c.bf16 %v641_v11, %v640_v10  ;;  %v538_v15 = vadd.f32 %v2118_v30, %v537_v12 }
 0x148   : > { %v1494_v14 = vpop.f32.mrf.mxu0 }
 0x149   : > { %1565 = vmatmul.mubr.msk.bf16.gmra.mxu1 %vm722_vm1, %v670_v13  ;;  %v642_v19 = vmax.f32 %v538_v15, 0.0 }
 0x14a   : > { %v540_v16 = vpop.f32.mrf.mxu0  ;;  %1568 = vmatprep.mubr.msk.bf16.mxu1 %vm1884_vm0, %v1883_v0 }
 0x14b   : > { %v541_v17 = vadd.f32 %v2118_v30, %v540_v16 }
 0x14c   : > { %v1495_v18 = vpop.f32.mrf.mxu0 }
 0x14d   : > { %v643_v20 = vmax.f32 %v541_v17, 0.0 }
 0x14e   : > { %v545_v21 = vpop.f32.mrf.mxu0 }
 0x14f   : > { %v671_v22 = vpack.c.bf16 %v643_v20, %v642_v19  ;;  %v546_v24 = vadd.f32 %v2118_v30, %v545_v21 }
 0x150   : > { %v1498_v23 = vpop.f32.mrf.mxu0 }
 0x151   : > { %1569 = vmatmul.mubr.msk.bf16.gmra.mxu1 %vm722_vm1, %v671_v22  ;;  %v644_v28 = vmax.f32 %v546_v24, 0.0 }
 0x152   : > { %v548_v25 = vpop.f32.mrf.mxu0  ;;  %1572 = vmatprep.mubr.msk.bf16.mxu1 %vm1884_vm0, %v1883_v0 }
 0x153   : > { %v549_v26 = vadd.f32 %v2118_v30, %v548_v25 }
 0x154   : > { %v1499_v27 = vpop.f32.mrf.mxu0 }
 0x155   : > { %v645_v29 = vmax.f32 %v549_v26, 0.0 }
 0x156   : > { %v553_v31 = vpop.f32.mrf.mxu0 }
 0x157   : > { %v672_v32 = vpack.c.bf16 %v645_v29, %v644_v28  ;;  %v554_v34 = vadd.f32 %v2118_v30, %v553_v31 }
 0x158   : > { %v1502_v33 = vpop.f32.mrf.mxu0 }
 0x159   : > { %1573 = vmatmul.mubr.msk.bf16.gmra.mxu1 %vm722_vm1, %v672_v32  ;;  %v646_v38 = vmax.f32 %v554_v34, 0.0 }
 0x15a   : > { %v556_v35 = vpop.f32.mrf.mxu0  ;;  %1576 = vmatprep.mubr.msk.bf16.mxu1 %vm1884_vm0, %v1883_v0 }
 0x15b   : > { %v557_v36 = vadd.f32 %v2118_v30, %v556_v35 }
 0x15c   : > { %v1503_v37 = vpop.f32.mrf.mxu0 }
 0x15d   : > { %v647_v39 = vmax.f32 %v557_v36, 0.0 }
 0x15e   : > { %v561_v40 = vpop.f32.mrf.mxu0 }
 0x15f   : > { %v673_v41 = vpack.c.bf16 %v647_v39, %v646_v38  ;;  %v562_v43 = vadd.f32 %v2118_v30, %v561_v40 }
 0x160   : > { %v1506_v42 = vpop.f32.mrf.mxu0 }
 0x161   : > { %1577 = vmatmul.mubr.msk.bf16.gmra.mxu1 %vm722_vm1, %v673_v41  ;;  %v648_v47 = vmax.f32 %v562_v43, 0.0 }
 0x162   : > { %v564_v44 = vpop.f32.mrf.mxu0  ;;  %1580 = vmatprep.mubr.msk.bf16.mxu1 %vm1884_vm0, %v1883_v0 }
 0x163   : > { %v565_v45 = vadd.f32 %v2118_v30, %v564_v44 }
 0x164   : > { %v1507_v46 = vpop.f32.mrf.mxu0 }
 0x165   : > { %v649_v48 = vmax.f32 %v565_v45, 0.0 }
 0x166   : > { %v569_v49 = vpop.f32.mrf.mxu0 }
 0x167   : > { %v674_v50 = vpack.c.bf16 %v649_v48, %v648_v47  ;;  %v570_v52 = vadd.f32 %v2118_v30, %v569_v49 }
 0x168   : > { %v1510_v51 = vpop.f32.mrf.mxu0 }
 0x169   : > { %1581 = vmatmul.mubr.msk.bf16.gmra.mxu1 %vm722_vm1, %v674_v50  ;;  %v650_v56 = vmax.f32 %v570_v52, 0.0 }
 0x16a   : > { %v572_v53 = vpop.f32.mrf.mxu0  ;;  %1584 = vmatprep.mubr.msk.bf16.mxu1 %vm1884_vm0, %v1883_v0 }
 0x16b   : > { %v573_v54 = vadd.f32 %v2118_v30, %v572_v53 }
 0x16c   : > { %v1511_v55 = vpop.f32.mrf.mxu0 }
 0x16d   : > { %v651_v57 = vmax.f32 %v573_v54, 0.0 }
 0x16e   : > { %v577_v58 = vpop.f32.mrf.mxu0 }
 0x16f   : > { %v675_v59 = vpack.c.bf16 %v651_v57, %v650_v56  ;;  %v578_v61 = vadd.f32 %v2118_v30, %v577_v58 }
 0x170   : > { %v1514_v60 = vpop.f32.mrf.mxu0 }
 0x171   : > { %1585 = vmatmul.mubr.msk.bf16.gmra.mxu1 %vm722_vm1, %v675_v59  ;;  %v652_v2 = vmax.f32 %v578_v61, 0.0  ;;  %v2207_v60 = vld [vmem:[%s2455_s4] ss:$0 sm:$0xff] }
 0x172   : > { %v580_v62 = vpop.f32.mrf.mxu0  ;;  %1588 = vmatprep.mubr.msk.bf16.mxu1 %vm1884_vm0, %v1883_v0 }
 0x173   : > { %v581_v63 = vadd.f32 %v2118_v30, %v580_v62 }
 0x174   : > { %v1515_v1 = vpop.f32.mrf.mxu0 }
 0x175   : > { %v653_v3 = vmax.f32 %v581_v63, 0.0 }
 0x176   : > { %v585_v4 = vpop.f32.mrf.mxu0 }
 0x177   : > { %v676_v5 = vpack.c.bf16 %v653_v3, %v652_v2  ;;  %v586_v7 = vadd.f32 %v2118_v30, %v585_v4 }
 0x178   : > { %v1518_v6 = vpop.f32.mrf.mxu0 }
 0x179   : > { %1589 = vmatmul.mubr.msk.bf16.gmra.mxu1 %vm722_vm1, %v676_v5  ;;  %v654_v11 = vmax.f32 %v586_v7, 0.0 }
 0x17a   : > { %v588_v8 = vpop.f32.mrf.mxu0  ;;  %1592 = vmatprep.mubr.msk.bf16.mxu1 %vm1884_vm0, %v1883_v0 }
 0x17b   : > { %v589_v9 = vadd.f32 %v2118_v30, %v588_v8 }
 0x17c   : > { %v1519_v10 = vpop.f32.mrf.mxu0 }
 0x17d   : > { %v655_v12 = vmax.f32 %v589_v9, 0.0 }
 0x17e   : > { %v593_v13 = vpop.f32.mrf.mxu0 }
 0x17f   : > { %v677_v14 = vpack.c.bf16 %v655_v12, %v654_v11  ;;  %v594_v16 = vadd.f32 %v2118_v30, %v593_v13 }
 0x180   : > { %v1522_v15 = vpop.f32.mrf.mxu0 }
 0x181   : > { %1593 = vmatmul.mubr.msk.bf16.gmra.mxu1 %vm722_vm1, %v677_v14  ;;  %v656_v20 = vmax.f32 %v594_v16, 0.0 }
 0x182   : > { %v596_v17 = vpop.f32.mrf.mxu0  ;;  %1596 = vmatprep.mubr.msk.bf16.mxu1 %vm1884_vm0, %v1883_v0 }
 0x183   : > { %v597_v18 = vadd.f32 %v2118_v30, %v596_v17 }
 0x184   : > { %v1523_v19 = vpop.f32.mrf.mxu0 }
 0x185   : > { %v657_v21 = vmax.f32 %v597_v18, 0.0 }
 0x186   : > { %v601_v22 = vpop.f32.mrf.mxu0 }
 0x187   : > { %v678_v23 = vpack.c.bf16 %v657_v21, %v656_v20  ;;  %v602_v25 = vadd.f32 %v2118_v30, %v601_v22 }
 0x188   : > { %v1526_v24 = vpop.f32.mrf.mxu0 }
 0x189   : > { %1597 = vmatmul.mubr.msk.bf16.gmra.mxu1 %vm722_vm1, %v678_v23  ;;  %v658_v29 = vmax.f32 %v602_v25, 0.0 }
 0x18a   : > { %v604_v26 = vpop.f32.mrf.mxu0  ;;  %1600 = vmatprep.mubr.msk.bf16.mxu1 %vm1884_vm0, %v1883_v0 }
 0x18b   : > { %v605_v27 = vadd.f32 %v2118_v30, %v604_v26 }
 0x18c   : > { %v1527_v28 = vpop.f32.mrf.mxu0 }
 0x18d   : > { %v659_v31 = vmax.f32 %v605_v27, 0.0 }
 0x18e   : > { %v609_v32 = vpop.f32.mrf.mxu0 }
 0x18f   : > { %v679_v33 = vpack.c.bf16 %v659_v31, %v658_v29  ;;  %v610_v35 = vadd.f32 %v2118_v30, %v609_v32 }
 0x190   : > { %v1530_v34 = vpop.f32.mrf.mxu0 }
 0x191   : > { %1601 = vmatmul.mubr.msk.bf16.gmra.mxu1 %vm722_vm1, %v679_v33  ;;  %v660_v39 = vmax.f32 %v610_v35, 0.0 }
 0x192   : > { %v612_v36 = vpop.f32.mrf.mxu0  ;;  %1604 = vmatprep.mubr.msk.bf16.mxu1 %vm1884_vm0, %v1883_v0 }
 0x193   : > { %v613_v37 = vadd.f32 %v2118_v30, %v612_v36 }
 0x194   : > { %v1531_v38 = vpop.f32.mrf.mxu0 }
 0x195   : > { %v661_v40 = vmax.f32 %v613_v37, 0.0 }
 0x196   : > { %v617_v41 = vpop.f32.mrf.mxu0 }
 0x197   : > { %v680_v42 = vpack.c.bf16 %v661_v40, %v660_v39  ;;  %v618_v44 = vadd.f32 %v2118_v30, %v617_v41 }
 0x198   : > { %v1534_v43 = vpop.f32.mrf.mxu0 }
 0x199   : > { %1605 = vmatmul.mubr.msk.bf16.gmra.mxu1 %vm722_vm1, %v680_v42  ;;  %v662_v48 = vmax.f32 %v618_v44, 0.0 }
 0x19a   : > { %v620_v45 = vpop.f32.mrf.mxu0  ;;  %1608 = vmatprep.mubr.msk.bf16.mxu1 %vm1884_vm0, %v1883_v0 }
 0x19b   : > { %v621_v46 = vadd.f32 %v2118_v30, %v620_v45 }
 0x19c   : > { %v1535_v47 = vpop.f32.mrf.mxu0 }
 0x19d   : > { %v663_v49 = vmax.f32 %v621_v46, 0.0 }
 0x19e   : > { %v625_v50 = vpop.f32.mrf.mxu0 }
 0x19f   : > { %v681_v51 = vpack.c.bf16 %v663_v49, %v662_v48  ;;  %v626_v53 = vadd.f32 %v2118_v30, %v625_v50 }
 0x1a0   : > { %v1538_v52 = vpop.f32.mrf.mxu0 }
 0x1a1   : > { %1609 = vmatmul.mubr.msk.bf16.gmra.mxu1 %vm722_vm1, %v681_v51  ;;  %v664_v57 = vmax.f32 %v626_v53, 0.0 }
 0x1a2   : > { %v628_v54 = vpop.f32.mrf.mxu0  ;;  %1612 = vmatprep.mubr.msk.bf16.mxu1 %vm1884_vm0, %v1883_v0 }
 0x1a3   : > { %v629_v55 = vadd.f32 %v2118_v30, %v628_v54 }
 0x1a4   : > { %v1539_v56 = vpop.f32.mrf.mxu0 }
 0x1a5   : > { %v665_v58 = vmax.f32 %v629_v55, 0.0 }
 0x1a7   : > { %v682_v59 = vpack.c.bf16 %v665_v58, %v664_v57 }
 0x1a9   : > { %1613 = vmatmul.mubr.msk.bf16.gmra.mxu1 %vm722_vm1, %v682_v59 }
 0x1e9   : > { %v808_v61 = vpop.f32.mrf.mxu1 }
 0x1ea   : > { %v809_v62 = vadd.f32 %v2207_v60, %v808_v61 }
 0x1eb   : > { %v1550_v63 = vpop.f32.mrf.mxu1 }
 0x1ec   : > { %944 = vst.msk [vmem:[%s2210_s9] sm:$0xff] %vm943_vm2, %v809_v62 }
 0x1ed   : > { %v811_v0 = vpop.f32.mrf.mxu1 }
 0x1ee   : > { %v812_v30 = vadd.f32 %v2207_v60, %v811_v0 }
 0x1ef   : > { %v1551_v1 = vpop.f32.mrf.mxu1 }
 0x1f0   : > { %945 = vst.msk [vmem:[%s2210_s9 + $0x8] sm:$0xff] %vm943_vm2, %v812_v30 }
 0x1f1   : > { %v816_v2 = vpop.f32.mrf.mxu1 }
 0x1f2   : > { %v817_v3 = vadd.f32 %v2207_v60, %v816_v2 }
 0x1f3   : > { %v1554_v4 = vpop.f32.mrf.mxu1 }
 0x1f4   : > { %946 = vst.msk [vmem:[%s2210_s9 + $0x10] sm:$0xff] %vm943_vm2, %v817_v3 }
 0x1f5   : > { %v819_v5 = vpop.f32.mrf.mxu1 }
 0x1f6   : > { %v820_v6 = vadd.f32 %v2207_v60, %v819_v5 }
 0x1f7   : > { %v1555_v7 = vpop.f32.mrf.mxu1 }
 0x1f8   : > { %947 = vst.msk [vmem:[%s2210_s9 + $0x18] sm:$0xff] %vm943_vm2, %v820_v6 }
 0x1f9   : > { %v824_v8 = vpop.f32.mrf.mxu1 }
 0x1fa   : > { %v825_v9 = vadd.f32 %v2207_v60, %v824_v8 }
 0x1fb   : > { %v1558_v10 = vpop.f32.mrf.mxu1 }
 0x1fc   : > { %948 = vst.msk [vmem:[%s2210_s9 + $0x20] sm:$0xff] %vm943_vm2, %v825_v9 }
 0x1fd   : > { %v827_v11 = vpop.f32.mrf.mxu1 }
 0x1fe   : > { %v828_v12 = vadd.f32 %v2207_v60, %v827_v11 }
 0x1ff   : > { %v1559_v13 = vpop.f32.mrf.mxu1 }
 0x200   : > { %949 = vst.msk [vmem:[%s2210_s9 + $0x28] sm:$0xff] %vm943_vm2, %v828_v12 }
 0x201   : > { %v832_v14 = vpop.f32.mrf.mxu1 }
 0x202   : > { %v833_v15 = vadd.f32 %v2207_v60, %v832_v14 }
 0x203   : > { %v1562_v16 = vpop.f32.mrf.mxu1 }
 0x204   : > { %950 = vst.msk [vmem:[%s2210_s9 + $0x30] sm:$0xff] %vm943_vm2, %v833_v15 }
 0x205   : > { %v835_v17 = vpop.f32.mrf.mxu1 }
 0x206   : > { %v836_v18 = vadd.f32 %v2207_v60, %v835_v17 }
 0x207   : > { %v1563_v19 = vpop.f32.mrf.mxu1 }
 0x208   : > { %951 = vst.msk [vmem:[%s2210_s9 + $0x38] sm:$0xff] %vm943_vm2, %v836_v18 }
 0x209   : > { %v840_v20 = vpop.f32.mrf.mxu1 }
 0x20a   : > { %v841_v21 = vadd.f32 %v2207_v60, %v840_v20 }
 0x20b   : > { %v1566_v22 = vpop.f32.mrf.mxu1 }
 0x20c   : > { %952 = vst.msk [vmem:[%s2210_s9 + $0x40] sm:$0xff] %vm943_vm2, %v841_v21 }
 0x20d   : > { %v843_v23 = vpop.f32.mrf.mxu1 }
 0x20e   : > { %v844_v24 = vadd.f32 %v2207_v60, %v843_v23 }
 0x20f   : > { %v1567_v25 = vpop.f32.mrf.mxu1 }
 0x210   : > { %953 = vst.msk [vmem:[%s2210_s9 + $0x48] sm:$0xff] %vm943_vm2, %v844_v24 }
 0x211   : > { %v848_v26 = vpop.f32.mrf.mxu1 }
 0x212   : > { %v849_v27 = vadd.f32 %v2207_v60, %v848_v26 }
 0x213   : > { %v1570_v28 = vpop.f32.mrf.mxu1 }
 0x214   : > { %954 = vst.msk [vmem:[%s2210_s9 + $0x50] sm:$0xff] %vm943_vm2, %v849_v27 }
 0x215   : > { %v851_v29 = vpop.f32.mrf.mxu1 }
 0x216   : > { %v852_v31 = vadd.f32 %v2207_v60, %v851_v29 }
 0x217   : > { %v1571_v32 = vpop.f32.mrf.mxu1 }
 0x218   : > { %955 = vst.msk [vmem:[%s2210_s9 + $0x58] sm:$0xff] %vm943_vm2, %v852_v31 }
 0x219   : > { %v856_v33 = vpop.f32.mrf.mxu1 }
 0x21a   : > { %v857_v34 = vadd.f32 %v2207_v60, %v856_v33 }
 0x21b   : > { %v1574_v35 = vpop.f32.mrf.mxu1 }
 0x21c   : > { %956 = vst.msk [vmem:[%s2210_s9 + $0x60] sm:$0xff] %vm943_vm2, %v857_v34 }
 0x21d   : > { %v859_v36 = vpop.f32.mrf.mxu1 }
 0x21e   : > { %v860_v37 = vadd.f32 %v2207_v60, %v859_v36 }
 0x21f   : > { %v1575_v38 = vpop.f32.mrf.mxu1 }
 0x220   : > { %957 = vst.msk [vmem:[%s2210_s9 + $0x68] sm:$0xff] %vm943_vm2, %v860_v37 }
 0x221   : > { %v864_v39 = vpop.f32.mrf.mxu1 }
 0x222   : > { %v865_v40 = vadd.f32 %v2207_v60, %v864_v39 }
 0x223   : > { %v1578_v41 = vpop.f32.mrf.mxu1 }
 0x224   : > { %958 = vst.msk [vmem:[%s2210_s9 + $0x70] sm:$0xff] %vm943_vm2, %v865_v40 }
 0x225   : > { %v867_v42 = vpop.f32.mrf.mxu1 }
 0x226   : > { %v868_v43 = vadd.f32 %v2207_v60, %v867_v42 }
 0x227   : > { %v1579_v44 = vpop.f32.mrf.mxu1 }
 0x228   : > { %959 = vst.msk [vmem:[%s2210_s9 + $0x78] sm:$0xff] %vm943_vm2, %v868_v43 }
 0x229   : > { %v872_v45 = vpop.f32.mrf.mxu1 }
 0x22a   : > { %v873_v46 = vadd.f32 %v2207_v60, %v872_v45 }
 0x22b   : > { %v1582_v47 = vpop.f32.mrf.mxu1 }
 0x22c   : > { %960 = vst.msk [vmem:[%s2210_s9 + $0x80] sm:$0xff] %vm943_vm2, %v873_v46 }
 0x22d   : > { %v875_v48 = vpop.f32.mrf.mxu1 }
 0x22e   : > { %v876_v49 = vadd.f32 %v2207_v60, %v875_v48 }
 0x22f   : > { %v1583_v50 = vpop.f32.mrf.mxu1 }
 0x230   : > { %961 = vst.msk [vmem:[%s2210_s9 + $0x88] sm:$0xff] %vm943_vm2, %v876_v49 }
 0x231   : > { %v880_v51 = vpop.f32.mrf.mxu1 }
 0x232   : > { %v881_v52 = vadd.f32 %v2207_v60, %v880_v51 }
 0x233   : > { %v1586_v53 = vpop.f32.mrf.mxu1 }
 0x234   : > { %962 = vst.msk [vmem:[%s2210_s9 + $0x90] sm:$0xff] %vm943_vm2, %v881_v52 }
 0x235   : > { %v883_v54 = vpop.f32.mrf.mxu1 }
 0x236   : > { %v884_v55 = vadd.f32 %v2207_v60, %v883_v54 }
 0x237   : > { %v1587_v56 = vpop.f32.mrf.mxu1 }
 0x238   : > { %963 = vst.msk [vmem:[%s2210_s9 + $0x98] sm:$0xff] %vm943_vm2, %v884_v55 }
 0x239   : > { %v888_v57 = vpop.f32.mrf.mxu1 }
 0x23a   : > { %v889_v58 = vadd.f32 %v2207_v60, %v888_v57 }
 0x23b   : > { %v1590_v59 = vpop.f32.mrf.mxu1 }
 0x23c   : > { %964 = vst.msk [vmem:[%s2210_s9 + $0xa0] sm:$0xff] %vm943_vm2, %v889_v58 }
 0x23d   : > { %v891_v61 = vpop.f32.mrf.mxu1 }
 0x23e   : > { %v892_v62 = vadd.f32 %v2207_v60, %v891_v61 }
 0x23f   : > { %v1591_v63 = vpop.f32.mrf.mxu1 }
 0x240   : > { %965 = vst.msk [vmem:[%s2210_s9 + $0xa8] sm:$0xff] %vm943_vm2, %v892_v62 }
 0x241   : > { %v896_v0 = vpop.f32.mrf.mxu1 }
 0x242   : > { %v897_v30 = vadd.f32 %v2207_v60, %v896_v0 }
 0x243   : > { %v1594_v1 = vpop.f32.mrf.mxu1 }
 0x244   : > { %966 = vst.msk [vmem:[%s2210_s9 + $0xb0] sm:$0xff] %vm943_vm2, %v897_v30 }
 0x245   : > { %v899_v2 = vpop.f32.mrf.mxu1 }
 0x246   : > { %v900_v3 = vadd.f32 %v2207_v60, %v899_v2 }
 0x247   : > { %v1595_v4 = vpop.f32.mrf.mxu1 }
 0x248   : > { %967 = vst.msk [vmem:[%s2210_s9 + $0xb8] sm:$0xff] %vm943_vm2, %v900_v3 }
 0x249   : > { %v904_v5 = vpop.f32.mrf.mxu1 }
 0x24a   : > { %v905_v6 = vadd.f32 %v2207_v60, %v904_v5 }
 0x24b   : > { %v1598_v7 = vpop.f32.mrf.mxu1 }
 0x24c   : > { %968 = vst.msk [vmem:[%s2210_s9 + $0xc0] sm:$0xff] %vm943_vm2, %v905_v6 }
 0x24d   : > { %v907_v8 = vpop.f32.mrf.mxu1 }
 0x24e   : > { %v908_v9 = vadd.f32 %v2207_v60, %v907_v8 }
 0x24f   : > { %v1599_v10 = vpop.f32.mrf.mxu1 }
 0x250   : > { %969 = vst.msk [vmem:[%s2210_s9 + $0xc8] sm:$0xff] %vm943_vm2, %v908_v9 }
 0x251   : > { %v912_v11 = vpop.f32.mrf.mxu1 }
 0x252   : > { %v913_v12 = vadd.f32 %v2207_v60, %v912_v11 }
 0x253   : > { %v1602_v13 = vpop.f32.mrf.mxu1 }
 0x254   : > { %970 = vst.msk [vmem:[%s2210_s9 + $0xd0] sm:$0xff] %vm943_vm2, %v913_v12 }
 0x255   : > { %v915_v14 = vpop.f32.mrf.mxu1 }
 0x256   : > { %v916_v15 = vadd.f32 %v2207_v60, %v915_v14 }
 0x257   : > { %v1603_v16 = vpop.f32.mrf.mxu1 }
 0x258   : > { %971 = vst.msk [vmem:[%s2210_s9 + $0xd8] sm:$0xff] %vm943_vm2, %v916_v15 }
 0x259   : > { %v920_v17 = vpop.f32.mrf.mxu1 }
 0x25a   : > { %v921_v18 = vadd.f32 %v2207_v60, %v920_v17 }
 0x25b   : > { %v1606_v19 = vpop.f32.mrf.mxu1 }
 0x25c   : > { %972 = vst.msk [vmem:[%s2210_s9 + $0xe0] sm:$0xff] %vm943_vm2, %v921_v18 }
 0x25d   : > { %v923_v20 = vpop.f32.mrf.mxu1 }
 0x25e   : > { %v924_v21 = vadd.f32 %v2207_v60, %v923_v20 }
 0x25f   : > { %v1607_v22 = vpop.f32.mrf.mxu1 }
 0x260   : > { %973 = vst.msk [vmem:[%s2210_s9 + $0xe8] sm:$0xff] %vm943_vm2, %v924_v21 }
 0x261   : > { %v928_v23 = vpop.f32.mrf.mxu1 }
 0x262   : > { %v929_v24 = vadd.f32 %v2207_v60, %v928_v23 }
 0x263   : > { %v1610_v25 = vpop.f32.mrf.mxu1 }
 0x264   : > { %974 = vst.msk [vmem:[%s2210_s9 + $0xf0] sm:$0xff] %vm943_vm2, %v929_v24 }
 0x265   : > { %v931_v26 = vpop.f32.mrf.mxu1 }
 0x266   : > { %v932_v27 = vadd.f32 %v2207_v60, %v931_v26 }
 0x267   : > { %v1611_v28 = vpop.f32.mrf.mxu1 }
 0x268   : > { %975 = vst.msk [vmem:[%s2210_s9 + $0xf8] sm:$0xff] %vm943_vm2, %v932_v27 }
 0x269   : > { %v936_v29 = vpop.f32.mrf.mxu1 }
 0x26a   : > { %v937_v31 = vadd.f32 %v2207_v60, %v936_v29 }
 0x26b   : > { %v1614_v32 = vpop.f32.mrf.mxu1 }
 0x26c   : > { %976 = vst.msk [vmem:[%s2210_s9 + $0x100] sm:$0xff] %vm943_vm2, %v937_v31  ;;  %984 = sbr.rel (!%p1955_p8) target bundleno = 688 (0x2b0), region = 48 }
 0x26d   : > { %v939_v33 = vpop.f32.mrf.mxu1 }
 0x26e   : > { %v940_v34 = vadd.f32 %v2207_v60, %v939_v33 }
 0x26f   : > { %v1615_v35 = vpop.f32.mrf.mxu1 }
 0x270   : > { %977 = vst.msk [vmem:[%s2210_s9 + $0x108] sm:$0xff] %vm943_vm2, %v940_v34 }
 0x271   : > { %s2471_s12 = smov (!%p987_p7, %s986_s12), 34 }
 0x272   : > { %s1396_s21 = sshll.u32 %s2471_s12, 7 }
 0x273   : > { %p1399_p11 = scmp.eq.s32.totalorder %s1396_s21, 0 }
 0x274   : > { %1750 = sdivrem.u32 (!%p1399_p11), %s2471_s12, 34 }
 0x275   : > { %995 = sbr.rel (%p1399_p11) target bundleno = 688 (0x2b0), region = 52 }
 0x27d   : > { %s2326_s28 = spop.drf %1750 }
 0x27e   : > { %p1400_p8 = scmp.le.s32.totalorder %s2326_s28, 0 }
 0x27f   : > { %s2459_s22 = smov (!%p1400_p8), %s2320_s18  ;;  %s2460_s8 = smov (!%p1400_p8), %s2210_s9 }
 0x280   : > { %1292 = sbr.rel (%p1400_p8) target bundleno = 663 (0x297), region = 134  ;;  %s2335_s10 = smov (!%p1400_p8), 0  }
 0x281   : > { %s2337_s27 = smov (!%p1400_p8), 0  }
 0x285 LB: >> { %v1126_v60 = vld [vmem:[%s1854_s8] sm:$0xff]  ;;  %v1128_v36 = vld [vmem:[%s1854_s8 + $0x8] sm:$0xff]  ;;  %v1130_v37 = vld [vmem:[%s1854_s8 + $0x10] sm:$0xff]  ;;  %s1194_s13 = sadd.s32 1, %s1858_s10  ;;  %s1120_s27 = sadd.s32 1, %s1862_s27   ;;  %s1862_s27 = sphi %s2337_s27, %s1120_s27   ;;  %s1858_s10 = sphi %s2335_s10, %s2463_s10   ;;  %s1854_s8 = sphi %s2460_s8, %s2462_s8   ;;  %s1850_s22 = sphi %s2459_s22, %s2461_s22  }
 0x286   : >> { %1127 = vst [vmem:[%s1850_s22] sm:$0xff] %v1126_v60  ;;  %1129 = vst [vmem:[%s1850_s22 + $0x8] sm:$0xff] %v1128_v36  ;;  %v1132_v38 = vld [vmem:[%s1854_s8 + $0x18] sm:$0xff]  ;;  %v1134_v39 = vld [vmem:[%s1854_s8 + $0x20] sm:$0xff]  ;;  %p1195_p4 = scmp.ge.s32.totalorder %s1194_s13, %s2326_s28  ;;  %p1119_p5 = scmp.ge.s32.totalorder %s1120_s27, %s2326_s28 }
 0x287   : >> { %1131 = vst [vmem:[%s1850_s22 + $0x10] sm:$0xff] %v1130_v37  ;;  %v1136_v40 = vld [vmem:[%s1854_s8 + $0x28] sm:$0xff]  ;;  %1133 = vst [vmem:[%s1850_s22 + $0x18] sm:$0xff] %v1132_v38  ;;  %v1138_v41 = vld [vmem:[%s1854_s8 + $0x30] sm:$0xff] }
 0x288   : >> { %1135 = vst [vmem:[%s1850_s22 + $0x20] sm:$0xff] %v1134_v39  ;;  %1137 = vst [vmem:[%s1850_s22 + $0x28] sm:$0xff] %v1136_v40  ;;  %v1140_v42 = vld [vmem:[%s1854_s8 + $0x38] sm:$0xff]  ;;  %v1142_v43 = vld [vmem:[%s1854_s8 + $0x40] sm:$0xff]  ;;  %s2473_s13 = smov (%p1195_p4, %s1194_s13), 0 }
 0x289   : >> { %1139 = vst [vmem:[%s1850_s22 + $0x30] sm:$0xff] %v1138_v41  ;;  %1141 = vst [vmem:[%s1850_s22 + $0x38] sm:$0xff] %v1140_v42  ;;  %v1144_v44 = vld [vmem:[%s1854_s8 + $0x48] sm:$0xff]  ;;  %v1146_v45 = vld [vmem:[%s1854_s8 + $0x50] sm:$0xff]  ;;  %s1197_s16 = smul.u32 272, %s2473_s13  ;;  %s2463_s10 = smov %s2473_s13 }
 0x28a   : >> { %1143 = vst [vmem:[%s1850_s22 + $0x40] sm:$0xff] %v1142_v43  ;;  %v1148_v46 = vld [vmem:[%s1854_s8 + $0x58] sm:$0xff]  ;;  %1145 = vst [vmem:[%s1850_s22 + $0x48] sm:$0xff] %v1144_v44  ;;  %v1150_v47 = vld [vmem:[%s1854_s8 + $0x60] sm:$0xff] }
 0x28b   : >> { %1147 = vst [vmem:[%s1850_s22 + $0x50] sm:$0xff] %v1146_v45  ;;  %1149 = vst [vmem:[%s1850_s22 + $0x58] sm:$0xff] %v1148_v46  ;;  %v1152_v48 = vld [vmem:[%s1854_s8 + $0x68] sm:$0xff]  ;;  %v1154_v49 = vld [vmem:[%s1854_s8 + $0x70] sm:$0xff]  ;;  %s1199_s25 = scalar_lea.vmem %s2210_s9, %s1197_s16 [#allocation4]   ;;  %s1200_s29 = scalar_lea.vmem %s2320_s18, %s1197_s16  }
 0x28c   : >> { %1151 = vst [vmem:[%s1850_s22 + $0x60] sm:$0xff] %v1150_v47  ;;  %1153 = vst [vmem:[%s1850_s22 + $0x68] sm:$0xff] %v1152_v48  ;;  %v1156_v50 = vld [vmem:[%s1854_s8 + $0x78] sm:$0xff]  ;;  %v1158_v51 = vld [vmem:[%s1854_s8 + $0x80] sm:$0xff] }
 0x28d   : >> { %1155 = vst [vmem:[%s1850_s22 + $0x70] sm:$0xff] %v1154_v49  ;;  %v1160_v52 = vld [vmem:[%s1854_s8 + $0x88] sm:$0xff]  ;;  %1157 = vst [vmem:[%s1850_s22 + $0x78] sm:$0xff] %v1156_v50  ;;  %v1162_v53 = vld [vmem:[%s1854_s8 + $0x90] sm:$0xff] }
 0x28e   : >> { %1159 = vst [vmem:[%s1850_s22 + $0x80] sm:$0xff] %v1158_v51  ;;  %1161 = vst [vmem:[%s1850_s22 + $0x88] sm:$0xff] %v1160_v52  ;;  %v1164_v54 = vld [vmem:[%s1854_s8 + $0x98] sm:$0xff]  ;;  %v1166_v55 = vld [vmem:[%s1854_s8 + $0xa0] sm:$0xff] }
 0x28f   : >> { %1163 = vst [vmem:[%s1850_s22 + $0x90] sm:$0xff] %v1162_v53  ;;  %1165 = vst [vmem:[%s1850_s22 + $0x98] sm:$0xff] %v1164_v54  ;;  %v1168_v56 = vld [vmem:[%s1854_s8 + $0xa8] sm:$0xff]  ;;  %v1170_v57 = vld [vmem:[%s1854_s8 + $0xb0] sm:$0xff] }
 0x290   : >> { %1167 = vst [vmem:[%s1850_s22 + $0xa0] sm:$0xff] %v1166_v55  ;;  %v1172_v58 = vld [vmem:[%s1854_s8 + $0xb8] sm:$0xff]  ;;  %1169 = vst [vmem:[%s1850_s22 + $0xa8] sm:$0xff] %v1168_v56  ;;  %v1174_v59 = vld [vmem:[%s1854_s8 + $0xc0] sm:$0xff] }
 0x291   : >> { %1171 = vst [vmem:[%s1850_s22 + $0xb0] sm:$0xff] %v1170_v57  ;;  %1173 = vst [vmem:[%s1850_s22 + $0xb8] sm:$0xff] %v1172_v58  ;;  %v1176_v61 = vld [vmem:[%s1854_s8 + $0xc8] sm:$0xff]  ;;  %v1178_v62 = vld [vmem:[%s1854_s8 + $0xd0] sm:$0xff] }
 0x292   : >> { %1175 = vst [vmem:[%s1850_s22 + $0xc0] sm:$0xff] %v1174_v59  ;;  %1177 = vst [vmem:[%s1850_s22 + $0xc8] sm:$0xff] %v1176_v61  ;;  %v1180_v63 = vld [vmem:[%s1854_s8 + $0xd8] sm:$0xff]  ;;  %v1182_v0 = vld [vmem:[%s1854_s8 + $0xe0] sm:$0xff]  ;;  %1122 = sbr.rel (!%p1119_p5) target bundleno = 645 (0x285), region = 140 }
 0x293   : >> { %1179 = vst [vmem:[%s1850_s22 + $0xd0] sm:$0xff] %v1178_v62  ;;  %v1184_v30 = vld [vmem:[%s1854_s8 + $0xe8] sm:$0xff]  ;;  %1181 = vst [vmem:[%s1850_s22 + $0xd8] sm:$0xff] %v1180_v63  ;;  %v1186_v1 = vld [vmem:[%s1854_s8 + $0xf0] sm:$0xff] }
 0x294   : >> { %1183 = vst [vmem:[%s1850_s22 + $0xe0] sm:$0xff] %v1182_v0  ;;  %1185 = vst [vmem:[%s1850_s22 + $0xe8] sm:$0xff] %v1184_v30  ;;  %v1188_v2 = vld [vmem:[%s1854_s8 + $0xf8] sm:$0xff]  ;;  %v1190_v3 = vld [vmem:[%s1854_s8 + $0x100] sm:$0xff] }
 0x295   : >> { %1187 = vst [vmem:[%s1850_s22 + $0xf0] sm:$0xff] %v1186_v1  ;;  %1189 = vst [vmem:[%s1850_s22 + $0xf8] sm:$0xff] %v1188_v2  ;;  %v1192_v4 = vld [vmem:[%s1854_s8 + $0x108] sm:$0xff]  ;;  %s2462_s8 = smov %s1199_s25 }
 0x296   : >> { %1191 = vst [vmem:[%s1850_s22 + $0x100] sm:$0xff] %v1190_v3  ;;  %1193 = vst [vmem:[%s1850_s22 + $0x108] sm:$0xff] %v1192_v4  ;;  %s2461_s22 = smov %s1200_s29 }
 0x297 PF: > { %1752 = sdivrem.u32 %s2471_s12, 34 }
 0x298   : > { %s1401_s30 = smul.u32 272, %s2326_s28 }
 0x29a   : > { %s1205_s24 = scalar_lea.vmem %s2210_s9, %s1401_s30 [#allocation4]   ;;  %s1207_s6 = scalar_lea.vmem %s2320_s18, %s1401_s30  }
 0x2a0   : > { %s1753_s7 = spop.drf %1752 }
 0x2a1   : > { %p1403_p6 = scmp.le.s32.totalorder %s1753_s7, 0 }
 0x2a2   : > { %s1864_s15 = smov (!%p1403_p6), %s1207_s6   ;;  %s1868_s11 = smov (!%p1403_p6), %s1205_s24  }
 0x2a3   : > { %1306 = sbr.rel (%p1403_p6) target bundleno = 688 (0x2b0), region = 145  ;;  %s1872_s14 = smov (!%p1403_p6), 0  }
 0x2a4   : > { %s1876_s17 = smov (!%p1403_p6), 0  }
 0x2a8 LB: >> { %v1217_v5 = vld [vmem:[%s1870_s11] sm:$0xff]  ;;  %s1219_s21 = sadd.s32 1, %s1874_s14  ;;  %s1211_s17 = sadd.s32 1, %s1878_s17   ;;  %s1878_s17 = sphi %s1876_s17, %s1211_s17   ;;  %s1874_s14 = sphi %s1872_s14, %s1873_s14   ;;  %s1870_s11 = sphi %s1868_s11, %s1224_s11   ;;  %s1866_s15 = sphi %s1864_s15, %s1225_s15  }
 0x2a9   : >> { %1218 = vst [vmem:[%s1866_s15] sm:$0xff] %v1217_v5  ;;  %p1220_p9 = scmp.ge.s32.totalorder %s1219_s21, %s1753_s7  ;;  %p1210_p10 = scmp.ge.s32.totalorder %s1211_s17, %s1753_s7 }
 0x2ab   : >> { %s2475_s21 = smov (%p1220_p9, %s1219_s21), 0  ;;  %1213 = sbr.rel (!%p1210_p10) target bundleno = 680 (0x2a8), region = 151 }
 0x2ac   : >> { %s1404_s9 = sshll.u32 %s2475_s21, 3  ;;  %s1873_s14 = smov %s2475_s21  }
 0x2ad   : >> { %s1224_s11 = scalar_lea.vmem %s1205_s24, %s1404_s9 [#allocation4]   ;;  %s1225_s15 = scalar_lea.vmem %s1207_s6, %s1404_s9  }
 0x2b0 PF: > { %p15_p12 = scmp.ge.s32.totalorder %s1937_s23, 4   ;;  %s2464_s18 = smov %s1838_s19 }
 0x2b1   : > { %s2465_s19 = smov %s1842_s20  ;;  %s2466_s20 = smov %s1947_s26 }
 0x2b2   : > { %s2467_s21 = smov %s1937_s23  ;;  %17 = sbr.rel (!%p15_p12) target bundleno = 3 (0x3), region = 162 }
 0x2b7   :  { %1241 = vsyncpa [#allocation3], 1 }
 0x2b8   :  { %1243 = vsyncpa [#allocation3 + $0x1], 1 }

</bundles_post_ra>
